<compile_context>
chip_gen: v7x
topology: tpu7x:2x2x1
jax: 0.10.0
libtpu: 0.0.40
codegen_flags: <defaults>
</compile_context>

<pallas_src>
import functools

import jax
import jax.numpy as jnp
from jax.experimental import pallas as pl
from jax.experimental.pallas import tpu as pltpu


def _softplus_kernel(x_ref, o_ref, *, c1, c2, c3, threshold, compute_dtype):
    # elementwise hot path on the VMEM tile
    x = x_ref[...].astype(compute_dtype)
    y = x
    if c2 != 1.0:                     # compile-time specialization
        y = y * c2
    if c3 != 0.0:
        y = y + c3
    # numerically-stable softplus with torch's threshold linearization
    safe_y = jnp.minimum(y, threshold)            # keep exp() in range
    sp = jnp.where(y > threshold, y, jnp.log1p(jnp.exp(safe_y)))
    if c1 != 1.0:
        sp = sp * c1
    o_ref[...] = sp.astype(o_ref.dtype)


def _default_vmem_limit_bytes():
    # Leave ~24 MiB headroom below physical VMEM:
    #   v7x  (64 MiB physical)   -> 40 MiB scoped limit
    #   v5e/v6e (128 MiB)        -> 48 MiB (capped)
    try:
        phys = int(pltpu.get_tpu_info().vmem_capacity_bytes)
    except Exception:
        phys = 64 << 20
    return max(32 << 20, min(48 << 20, phys - (24 << 20)))


def _choose_tile_rows(rows, max_tile_rows, sublane_mult, min_grid_steps):
    """Pick a row tile: sublane-aligned, evenly-dividing if possible, and
    small enough to yield at least `min_grid_steps` grid steps."""
    if rows <= sublane_mult:
        return rows                               # full-dim block; always legal
    cap = min(max_tile_rows, rows)
    if min_grid_steps > 1:
        cap = min(cap, rows // min_grid_steps)    # force >= min_grid_steps blocks
    cap = max(cap, sublane_mult)
    # best: largest sublane-aligned tile <= cap that divides rows evenly
    t = (cap // sublane_mult) * sublane_mult
    while t >= sublane_mult:
        if rows % t == 0:
            return t
        t -= sublane_mult
    # fallback: sublane-aligned tile with a masked (ragged) final block
    return max(sublane_mult, (cap // sublane_mult) * sublane_mult)


def softplus_pallas(x, c1=1.0, c2=1.0, c3=0.0, threshold=20.0,
                    target_block_bytes=8 * 1024 * 1024,
                    vmem_limit_bytes=None, donate_input=False):
    """c1 * softplus(c2 * x + c3), elementwise, via a Pallas TPU kernel."""
    orig_shape = x.shape
    dtype = x.dtype
    n = x.size
    itemsize = jnp.dtype(dtype).itemsize

    LANES = 128
    n_pad = ((n + LANES - 1) // LANES) * LANES

    x_flat = x.reshape(-1)
    if n_pad != n:
        # Rare for NN shapes; when triggered it adds one extra pass over the
        # tensor (low priority per review).
        x_flat = jnp.pad(x_flat, (0, n_pad - n))

    # widest lane-dense slab width (multiple of 128) dividing the flat length
    wide = LANES
    for cand in (8192, 4096, 2048, 1024, 512, 256, 128):
        if n_pad % cand == 0:
            wide = cand
            break
    rows = n_pad // wide

    # packed-sublane multiple for this dtype (f32: 8, bf16/f16: 16, int8: 32)
    sublane_mult = max(8, 32 // itemsize)
    max_tile_rows = max(1, target_block_bytes // (wide * itemsize))
    min_grid_steps = 2 if rows >= 16 else 1       # keep both v7x TCs busy
    tile_rows = _choose_tile_rows(rows, max_tile_rows, sublane_mult, min_grid_steps)

    x2d = x_flat.reshape(rows, wide)
    grid = (pl.cdiv(rows, tile_rows),)

    # compute natively in bf16/f16 (halves vreg + EUP pressure); f32 stays f32
    if jnp.issubdtype(dtype, jnp.floating) and itemsize <= 4:
        compute_dtype = dtype
    else:
        compute_dtype = jnp.float32

    kernel = functools.partial(
        _softplus_kernel,
        c1=float(c1), c2=float(c2), c3=float(c3), threshold=float(threshold),
        compute_dtype=compute_dtype,
    )

    if vmem_limit_bytes is None:
        vmem_limit_bytes = _default_vmem_limit_bytes()

    call_kwargs = {}
    if donate_input:
        # alias input -> output; only safe when the caller no longer needs x
        call_kwargs["input_output_aliases"] = {0: 0}

    out2d = pl.pallas_call(
        kernel,
        out_shape=jax.ShapeDtypeStruct((rows, wide), dtype),
        grid_spec=pltpu.PrefetchScalarGridSpec(
            num_scalar_prefetch=0,
            grid=grid,
            in_specs=[pl.BlockSpec((tile_rows, wide), lambda i: (i, 0))],
            out_specs=pl.BlockSpec((tile_rows, wide), lambda i: (i, 0)),
        ),
        compiler_params=pltpu.CompilerParams(
            dimension_semantics=("parallel",),
            vmem_limit_bytes=int(vmem_limit_bytes),
        ),
        cost_estimate=pl.CostEstimate(
            flops=5 * n,
            transcendentals=2 * n,
            bytes_accessed=2 * n * itemsize,
        ),
        **call_kwargs,
    )(x2d)

    out_flat = out2d.reshape(-1)
    if n_pad != n:
        out_flat = out_flat[:n]
    return out_flat.reshape(orig_shape)


def _softplus_ref(x, c1, c2, c3, threshold=20.0):
    # pure-JAX reference matching torch: c1 * softplus(c2*x + c3)
    y = c2 * x + c3
    return c1 * jnp.where(y > threshold, y,
                          jnp.log1p(jnp.exp(jnp.minimum(y, threshold))))


if __name__ == "__main__":
    key = jax.random.PRNGKey(0)
    # NCHW input, small shapes: batch=2, channels=4, spatial=16x16.
    # Scale so some values cross the threshold=20 linear branch.
    x = jax.random.normal(key, (2, 4, 16, 16), dtype=jnp.float32) * 15.0

    # default module params (c1=1, c2=1, c3=0)
    out = softplus_pallas(x)
    jax.block_until_ready(out)
    ref = _softplus_ref(x, 1.0, 1.0, 0.0)
    assert out.shape == x.shape
    assert out.dtype == x.dtype
    assert jnp.max(jnp.abs(out - ref)) < 1e-5

    # non-default params
    out2 = softplus_pallas(x, c1=2.0, c2=0.5, c3=1.0)
    jax.block_until_ready(out2)
    ref2 = _softplus_ref(x, 2.0, 0.5, 1.0)
    assert jnp.max(jnp.abs(out2 - ref2)) < 1e-5

    # bf16 input exercises the native low-precision compute path (v6e/v7x)
    xb = x.astype(jnp.bfloat16)
    outb = softplus_pallas(xb)
    jax.block_until_ready(outb)
    refb = _softplus_ref(xb.astype(jnp.float32), 1.0, 1.0, 0.0)
    assert outb.dtype == jnp.bfloat16
    assert jnp.max(jnp.abs(outb.astype(jnp.float32) - refb)) < 1.0

    print("KERNEL_OK")
</pallas_src>

<mosaic_0001>
module attributes {stable_mosaic.version = 11 : i64} {
  func.func @_softplus_kernel(%arg0: i32, %arg1: memref<1x2048xf32, #tpu.memory_space<vmem>>, %arg2: memref<1x2048xf32, #tpu.memory_space<vmem>>) attributes {dimension_semantics = [#tpu.dimension_semantics<parallel>], iteration_bounds = array<i64: 1>, scalar_prefetch = 0 : i64, scratch_operands = 0 : i64, tpu.core_type = #tpu.core_type<tc>, window_params = [{transform_indices = @transform_0, window_bounds = array<i64: 1, 2048>}, {transform_indices = @transform_1, window_bounds = array<i64: 1, 2048>}]} {
    %c0 = arith.constant 0 : index
    %c0_0 = arith.constant 0 : index
    %0 = vector.load %arg1[%c0, %c0_0] : memref<1x2048xf32, #tpu.memory_space<vmem>>, vector<1x2048xf32>
    %cst = arith.constant 2.000000e+01 : f32
    %1 = vector.broadcast %cst : f32 to vector<1x2048xf32>
    %2 = arith.minimumf %0, %1 : vector<1x2048xf32>
    %cst_1 = arith.constant 2.000000e+01 : f32
    %3 = vector.broadcast %cst_1 : f32 to vector<1x2048xf32>
    %4 = arith.cmpf ogt, %0, %3 : vector<1x2048xf32>
    %5 = math.exp %2 : vector<1x2048xf32>
    %6 = math.log1p %5 : vector<1x2048xf32>
    %7 = arith.select %4, %0, %6 : vector<1x2048xi1>, vector<1x2048xf32>
    %c0_2 = arith.constant 0 : index
    %c0_3 = arith.constant 0 : index
    %8 = vector.load %arg2[%c0_2, %c0_3] : memref<1x2048xf32, #tpu.memory_space<vmem>>, vector<1x2048xf32>
    tpu.vector_store %arg2[%c0_2, %c0_3], %7 {strides = array<i32>} : memref<1x2048xf32, #tpu.memory_space<vmem>>, vector<1x2048xf32>,
    return
  }
  func.func @transform_0(%arg0: i32) -> (i32, i32) {
    %c0_i32 = arith.constant 0 : i32
    %c0_i32_0 = arith.constant 0 : i32
    return %arg0, %c0_i32 : i32, i32
  }
  func.func @transform_1(%arg0: i32) -> (i32, i32) {
    %c0_i32 = arith.constant 0 : i32
    %c0_i32_0 = arith.constant 0 : i32
    return %arg0, %c0_i32 : i32, i32
  }
}

</mosaic_0001>

<bundles_post_ra>
// kernel: tpu_custom_call.1
= control target key start
LH: loop header
LB: loop body
LE: loop exit
PB: predicated region body
PF: predicated region fallthrough
CT: control target
= control target key end

     0   :  { %6 = vsyncpa [#allocation3], 0  ;;  %s162_s0 = inlined_call_operand.hbm [shape: f32[1,2048], index: 0, kind: input, shape index: {}]   ;;  %s163_s1 = inlined_call_operand.hbm [shape: f32[1,2048], index: 1, kind: output, shape index: {}]  }
   0x1   :  { %7 = vsyncpa [#allocation4], 0  ;;  %s126_s6 = smov [#allocation2]   ;;  %s78_s10 = scalar_lea.hbm %s162_s0, 256 }
   0x2   :  { %s14_s7 = sshll.u32 %s126_s6, 4  ;;  %p79_p0 = scmp.ne.s32.totalorder %s162_s0, %s78_s10  ;;  %s15_s7 = int_to_ptr.vmem [resolvable:$true] %s14_s7 }
   0x3   :  { %p82_p1 = scmp.lt.u32.totalorder %s78_s10, %s162_s0 }
   0x5   :  { %p84_p2 = pnand %p82_p1, %p79_p0 }
   0x7   :  { %87 = shalt.err (!%p84_p2)
}
   0x8   :  { %s88_s15 = scalar_lea.vmem %s15_s7, 256  ;;  %p93_p4 = scmp.lt.s32.totalorder %s15_s7, %s15_s7 }
   0x9   :  { %p89_p3 = scmp.ne.s32.totalorder %s15_s7, %s88_s15  ;;  %p94_p5 = scmp.lt.s32.totalorder %s88_s15, %s88_s15 }
   0xb   :  { %p95_p6 = por %p94_p5, %p93_p4 }
   0xd   :  { %p96_p7 = pnand %p95_p6, %p89_p3 }
   0xf   :  { %99 = shalt.err (!%p96_p7)
}
  0x10   :  { %17 = dma.hbm_to_vmem [thread:$0]  %s162_s0, 256, %s15_s7, [#allocation3]  }
  0x11   :  { %122 = dma.done.wait [#allocation3], 256  }
  0x12   :  { %123 = vsyncadd [#allocation3], 4294967040  ;;  %v21_v0 = vld [vmem:[#allocation2] sm:$0xff]  ;;  %v22_v1 = vld [vmem:[#allocation2 + $0x8] sm:$0xff]  ;;  %s127_s0 = smov [#allocation5]  }
  0x13   :  { %v23_v2 = vmin.f32 %v21_v0, 20.0  ;;  %v24_v3 = vmin.f32 %v22_v1, 20.0  ;;  %vm25_vm1 = vcmp.gt.f32.partialorder %v21_v0, 20.0  ;;  %s59_s18 = sshll.u32 %s127_s0, 4  ;;  %vm26_vm3 = vcmp.gt.f32.partialorder %v22_v1, 20.0  ;;  %s60_s18 = int_to_ptr.vmem [resolvable:$true] %s59_s18 }
  0x14   :  { %s100_s19 = scalar_lea.vmem %s60_s18, 256  ;;  %p105_p9 = scmp.lt.s32.totalorder %s60_s18, %s60_s18 }
  0x15   :  { %v27_v4 = vmul.f32 1.442695, %v23_v2  ;;  %v29_v5 = vmul.f32 1.442695, %v24_v3  ;;  %p101_p8 = scmp.ne.s32.totalorder %s60_s18, %s100_s19  ;;  %p106_p10 = scmp.lt.s32.totalorder %s100_s19, %s100_s19 }
  0x17   :  { %70 = vpow2.f32 %v27_v4  ;;  %p107_p11 = por %p106_p10, %p105_p9 }
  0x18   :  { %72 = vpow2.f32 %v29_v5 }
  0x19   :  { %p108_p12 = pnand %p107_p11, %p101_p8 }
  0x21   :  { %v71_v6 = vpop.eup %70 }
  0x22   :  { %v73_v7 = vpop.eup %72  ;;  %v31_v8 = vadd.f32 1.0, %v71_v6  ;;  %v34_v10 = vmul.f32 -0.5, %v71_v6  ;;  %v37_v13 = vand.u32 2147483647, %v71_v6 }
  0x23   :  { %v40_v9 = vadd.f32 1.0, %v73_v7  ;;  %v43_v11 = vmul.f32 -0.5, %v73_v7  ;;  %v46_v15 = vand.u32 2147483647, %v73_v7 }
  0x24   :  { %74 = vlog2.f32 %v31_v8  ;;  %v35_v12 = vadd.f32 1.0, %v34_v10  ;;  %vm38_vm0 = vcmp.lt.f32.partialorder %v37_v13, 0.0004427343 }
  0x25   :  { %76 = vlog2.f32 %v40_v9  ;;  %v44_v14 = vadd.f32 1.0, %v43_v11  ;;  %vm47_vm2 = vcmp.lt.f32.partialorder %v46_v15, 0.0004427343 }
  0x26   :  { %v36_v16 = vmul.f32 %v71_v6, %v35_v12 }
  0x27   :  { %v45_v18 = vmul.f32 %v73_v7, %v44_v14 }
  0x2e   :  { %v75_v17 = vpop.eup %74 }
  0x2f   :  { %v77_v19 = vpop.eup %76  ;;  %v33_v20 = vmul.f32 0.6931472, %v75_v17 }
  0x30   :  { %v42_v21 = vmul.f32 0.6931472, %v77_v19 }
  0x31   :  { %v39_v22 = vsel %vm38_vm0, %v36_v16, %v33_v20 }
  0x32   :  { %v49_v23 = vsel %vm25_vm1, %v21_v0, %v39_v22  ;;  %v48_v24 = vsel %vm47_vm2, %v45_v18, %v42_v21 }
  0x33   :  { %51 = vst [vmem:[#allocation5] sm:$0xff] %v49_v23  ;;  %v50_v25 = vsel %vm26_vm3, %v22_v1, %v48_v24 }
  0x34   :  { %52 = vst [vmem:[#allocation5 + $0x8] sm:$0xff] %v50_v25 }
  0x35   :  { %111 = shalt.err (!%p108_p12)
}
  0x36   :  { %s112_s22 = scalar_lea.hbm %s163_s1, 256 }
  0x37   :  { %p113_p13 = scmp.ne.s32.totalorder %s163_s1, %s112_s22  ;;  %p116_p0 = scmp.lt.u32.totalorder %s112_s22, %s163_s1 }
  0x39   :  { %p118_p1 = pnand %p116_p0, %p113_p13 }
  0x3b   :  { %121 = shalt.err (!%p118_p1)
}
  0x3c   :  { %62 = dma.vmem_to_hbm [thread:$0]  %s60_s18, 256, %s163_s1, [#allocation4]  }
  0x3d   :  { %124 = dma.done.wait [#allocation4], 256  }
  0x3e   :  { %125 = vsyncadd [#allocation4], 4294967040 }
  0x3f   :  { %66 = vsyncpa [#allocation3], 1 }
  0x40   :  { %67 = vsyncpa [#allocation4], 1 }

</bundles_post_ra>
